<compile_context>
chip_gen: v7x
topology: tpu7x:2x2x1
jax: 0.10.0
libtpu: 0.0.40
codegen_flags: <defaults>
</compile_context>

<pallas_src>
import functools
import math

import jax
import jax.numpy as jnp
from jax import lax
from jax.experimental import pallas as pl
from jax.experimental.pallas import tpu as pltpu


def _round_up(x, m):
    return ((x + m - 1) // m) * m


def _focal_kernel(logits_ref, target_ref, loss_ref, *, alpha, gamma, num_classes):
    # logits_ref: (1, C, TP)  (any float dtype)
    # target_ref: (1, 1, TP)  int32
    # loss_ref  : (1, 1, TP)  f32
    x = logits_ref[0].astype(jnp.float32)          # (C, TP) f32 compute
    t = target_ref[0]                              # (1, TP) int32

    # Numerically stable log-sum-exp over the class (sublane) axis.
    m = jnp.max(x, axis=0, keepdims=True)          # (1, TP)
    z = x - m                                      # (C, TP)
    ez = jnp.exp(z)                                # (C, TP)
    denom = jnp.sum(ez, axis=0, keepdims=True)     # (1, TP), >= 1

    # Gather z at the target class: (C,1) iota broadcast against t on the lane
    # axis -> bool mask, masked select + sublane reduce (XLU).  Avoids a full
    # (C, TP) int32 iota and a (C, TP) f32 one-hot.
    class_ids = lax.broadcasted_iota(jnp.int32, (num_classes, 1), 0)   # (C, 1)
    mask = class_ids == t                                              # (C, TP)
    z_t = jnp.sum(jnp.where(mask, z, 0.0), axis=0, keepdims=True)      # (1, TP)

    # Focal term only at the target class (all (1, TP)-sized from here on).
    log_p_t = z_t - jnp.log(denom)                 # log softmax at target
    p_t = jnp.exp(log_p_t)                         # softmax at target
    one_m_p = 1.0 - p_t

    g = float(gamma)
    if g == 0.0:
        weight = jnp.ones_like(one_m_p)
    elif g.is_integer() and 0 < g <= 8:
        # Repeated multiplication on the VPU instead of exp/log on the EUP.
        weight = one_m_p
        for _ in range(int(g) - 1):
            weight = weight * one_m_p
    else:
        weight = jnp.power(one_m_p, g)

    loss = (-alpha) * weight * log_p_t             # (1, TP)
    loss_ref[0] = loss.astype(loss_ref.dtype)


def focal_loss_pallas(logits, target, alpha, gamma=2.0, reduction="none"):
    """logits: (N, C, *) float ; target: (N, *) int."""
    N, C = logits.shape[0], logits.shape[1]
    spatial = logits.shape[2:]
    P = int(math.prod(spatial)) if spatial else 1

    logits_f = logits.reshape(N, C, P)                       # keep input dtype (bf16 OK)
    target_f = target.reshape(N, 1, P).astype(jnp.int32)

    # --- choose pixel tile: multiple of 128, bounded by a ~8 MiB logits buffer
    # (double-buffered -> ~16 MiB resident), capped at 8192, and never larger
    # than the (128-rounded) image so tiny inputs are not over-padded.
    itemsize = jnp.dtype(logits_f.dtype).itemsize
    budget_bytes = 8 * 1024 * 1024
    max_tile = max(128, (budget_bytes // (C * itemsize)) // 128 * 128)
    tile_p = min(8192, max_tile, _round_up(P, 128))

    p_pad = _round_up(P, tile_p)
    if p_pad != P:
        pad = p_pad - P
        # Zero logits -> uniform softmax, finite loss at padded pixels; they are
        # sliced off before any reduction, so they never corrupt mean/sum.
        logits_f = jnp.pad(logits_f, ((0, 0), (0, 0), (0, pad)))
        target_f = jnp.pad(target_f, ((0, 0), (0, 0), (0, pad)))

    num_tiles = p_pad // tile_p

    kernel = functools.partial(
        _focal_kernel, alpha=float(alpha), gamma=float(gamma), num_classes=C
    )

    loss_flat = pl.pallas_call(
        kernel,
        out_shape=jax.ShapeDtypeStruct((N, 1, p_pad), jnp.float32),
        grid_spec=pltpu.PrefetchScalarGridSpec(
            num_scalar_prefetch=0,
            grid=(N, num_tiles),
            in_specs=[
                pl.BlockSpec((1, C, tile_p), lambda b, p: (b, 0, p)),
                pl.BlockSpec((1, 1, tile_p), lambda b, p: (b, 0, p)),
            ],
            out_specs=pl.BlockSpec((1, 1, tile_p), lambda b, p: (b, 0, p)),
        ),
        compiler_params=pltpu.CompilerParams(
            dimension_semantics=("parallel", "parallel"),
        ),
    )(logits_f, target_f)

    loss_none = loss_flat[:, 0, :P].reshape((N,) + spatial)
    if reduction == "none":
        return loss_none
    elif reduction == "mean":
        # TODO(synk): could accumulate the scalar in-kernel to skip one HBM
        # round-trip of the per-pixel loss; kept in plain JAX for clarity.
        return jnp.mean(loss_none)
    elif reduction == "sum":
        return jnp.sum(loss_none)
    else:
        raise NotImplementedError(f"Invalid reduction mode: {reduction}")


class FocalLoss:
    """JAX/Pallas mirror of the PyTorch FocalLoss module (forward only)."""

    def __init__(self, alpha, gamma=2.0, reduction="none", eps=None):
        self.alpha = alpha
        self.gamma = gamma
        self.reduction = reduction
        self.eps = eps  # deprecated / unused

    def __call__(self, input, target):
        return focal_loss_pallas(input, target, self.alpha, self.gamma, self.reduction)


def _focal_loss_ref(logits, target, alpha, gamma, reduction):
    # pure-JAX reference for correctness check
    logits = logits.astype(jnp.float32)
    p = jax.nn.softmax(logits, axis=1)
    log_p = jax.nn.log_softmax(logits, axis=1)
    one_hot = jax.nn.one_hot(target, logits.shape[1], axis=1, dtype=logits.dtype)
    focal = -alpha * jnp.power(1.0 - p, gamma) * log_p
    loss = jnp.einsum("bc...,bc...->b...", one_hot, focal)
    if reduction == "mean":
        return jnp.mean(loss)
    if reduction == "sum":
        return jnp.sum(loss)
    return loss


if __name__ == "__main__":
    key = jax.random.PRNGKey(0)

    # Case 1: NCHW, P a multiple of 128 (no padding path).
    N, C, H, W = 2, 4, 16, 16
    k1, k2, k3, k4 = jax.random.split(key, 4)
    logits = jax.random.normal(k1, (N, C, H, W), dtype=jnp.float32)
    target = jax.random.randint(k2, (N, H, W), 0, C, dtype=jnp.int32)

    crit_none = FocalLoss(alpha=0.5, gamma=2.0, reduction="none")
    crit_mean = FocalLoss(alpha=0.5, gamma=2.0, reduction="mean")

    out_none = jax.block_until_ready(crit_none(logits, target))
    out_mean = jax.block_until_ready(crit_mean(logits, target))

    ref_none = _focal_loss_ref(logits, target, 0.5, 2.0, "none")
    ref_mean = _focal_loss_ref(logits, target, 0.5, 2.0, "mean")

    assert out_none.shape == (N, H, W)
    assert jnp.allclose(out_none, ref_none, atol=1e-5, rtol=1e-5)
    assert jnp.allclose(out_mean, ref_mean, atol=1e-5, rtol=1e-5)

    # Case 2: small odd spatial size (exercises the 128-padding + slice path)
    # matching the docstring example (1, 5, 3, 5), plus non-integer gamma.
    logits2 = jax.random.normal(k3, (1, 5, 3, 5), dtype=jnp.float32)
    target2 = jax.random.randint(k4, (1, 3, 5), 0, 5, dtype=jnp.int32)
    crit_sum = FocalLoss(alpha=0.25, gamma=1.5, reduction="sum")
    out_sum = jax.block_until_ready(crit_sum(logits2, target2))
    ref_sum = _focal_loss_ref(logits2, target2, 0.25, 1.5, "sum")
    assert jnp.allclose(out_sum, ref_sum, atol=1e-5, rtol=1e-5)

    print("KERNEL_OK")
</pallas_src>

<mosaic_0001>
module attributes {stable_mosaic.version = 11 : i64} {
  func.func @_focal_kernel(%arg0: i32, %arg1: i32, %arg2: memref<1x4x256xf32, #tpu.memory_space<vmem>>, %arg3: memref<1x1x256xi32, #tpu.memory_space<vmem>>, %arg4: memref<1x1x256xf32, #tpu.memory_space<vmem>>) attributes {dimension_semantics = [#tpu.dimension_semantics<parallel>, #tpu.dimension_semantics<parallel>], iteration_bounds = array<i64: 2, 1>, scalar_prefetch = 0 : i64, scratch_operands = 0 : i64, tpu.core_type = #tpu.core_type<tc>, window_params = [{transform_indices = @transform_0, window_bounds = array<i64: 1, 4, 256>}, {transform_indices = @transform_1, window_bounds = array<i64: 1, 1, 256>}, {transform_indices = @transform_2, window_bounds = array<i64: 1, 1, 256>}]} {
    %c0 = arith.constant 0 : index
    %c0_0 = arith.constant 0 : index
    %c0_1 = arith.constant 0 : index
    %0 = vector.load %arg2[%c0, %c0_0, %c0_1] : memref<1x4x256xf32, #tpu.memory_space<vmem>>, vector<1x4x256xf32>
    %1 = vector.shape_cast %0 : vector<1x4x256xf32> to vector<4x256xf32>
    %c0_2 = arith.constant 0 : index
    %c0_3 = arith.constant 0 : index
    %c0_4 = arith.constant 0 : index
    %2 = vector.load %arg3[%c0_2, %c0_3, %c0_4] : memref<1x1x256xi32, #tpu.memory_space<vmem>>, vector<1x1x256xi32>
    %3 = vector.shape_cast %2 : vector<1x1x256xi32> to vector<1x256xi32>
    %cst = arith.constant dense<0xFF800000> : vector<256xf32>
    %4 = vector.multi_reduction <maximumf>, %1, %cst [0] : vector<4x256xf32> to vector<256xf32>
    %5 = vector.shape_cast %4 : vector<256xf32> to vector<1x256xf32>
    %6 = vector.broadcast %5 : vector<1x256xf32> to vector<4x256xf32>
    %7 = arith.subf %1, %6 : vector<4x256xf32>
    %8 = math.exp %7 : vector<4x256xf32>
    %cst_5 = arith.constant dense<0.000000e+00> : vector<256xf32>
    %9 = vector.multi_reduction <add>, %8, %cst_5 [0] : vector<4x256xf32> to vector<256xf32>
    %10 = vector.shape_cast %9 : vector<256xf32> to vector<1x256xf32>
    %11 = tpu.iota {dimensions = array<i32: 0>} : vector<4x1xi32>
    %12 = vector.broadcast %11 : vector<4x1xi32> to vector<4x256xi32>
    %13 = vector.broadcast %3 : vector<1x256xi32> to vector<4x256xi32>
    %14 = arith.cmpi eq, %12, %13 : vector<4x256xi32>
    %cst_6 = arith.constant 0.000000e+00 : f32
    %15 = vector.broadcast %cst_6 : f32 to vector<4x256xf32>
    %16 = arith.select %14, %7, %15 : vector<4x256xi1>, vector<4x256xf32>
    %cst_7 = arith.constant dense<0.000000e+00> : vector<256xf32>
    %17 = vector.multi_reduction <add>, %16, %cst_7 [0] : vector<4x256xf32> to vector<256xf32>
    %18 = vector.shape_cast %17 : vector<256xf32> to vector<1x256xf32>
    %19 = math.log %10 : vector<1x256xf32>
    %20 = arith.subf %18, %19 : vector<1x256xf32>
    %21 = math.exp %20 : vector<1x256xf32>
    %cst_8 = arith.constant 1.000000e+00 : f32
    %22 = vector.broadcast %cst_8 : f32 to vector<1x256xf32>
    %23 = arith.subf %22, %21 : vector<1x256xf32>
    %24 = arith.mulf %23, %23 : vector<1x256xf32>
    %cst_9 = arith.constant -5.000000e-01 : f32
    %25 = vector.broadcast %cst_9 : f32 to vector<1x256xf32>
    %26 = arith.mulf %25, %24 : vector<1x256xf32>
    %27 = arith.mulf %26, %20 : vector<1x256xf32>
    %c0_10 = arith.constant 0 : index
    %c0_11 = arith.constant 0 : index
    %c0_12 = arith.constant 0 : index
    %28 = vector.load %arg4[%c0_10, %c0_11, %c0_12] : memref<1x1x256xf32, #tpu.memory_space<vmem>>, vector<1x1x256xf32>
    %29 = vector.shape_cast %28 : vector<1x1x256xf32> to vector<1x256xf32>
    %30 = vector.shape_cast %27 : vector<1x256xf32> to vector<1x1x256xf32>
    tpu.vector_store %arg4[%c0_10, %c0_11, %c0_12], %30 {strides = array<i32>} : memref<1x1x256xf32, #tpu.memory_space<vmem>>, vector<1x1x256xf32>,
    return
  }
  func.func @transform_0(%arg0: i32, %arg1: i32) -> (i32, i32, i32) {
    %c0_i32 = arith.constant 0 : i32
    %c0_i32_0 = arith.constant 0 : i32
    return %arg0, %c0_i32, %arg1 : i32, i32, i32
  }
  func.func @transform_1(%arg0: i32, %arg1: i32) -> (i32, i32, i32) {
    %c0_i32 = arith.constant 0 : i32
    %c0_i32_0 = arith.constant 0 : i32
    return %arg0, %c0_i32, %arg1 : i32, i32, i32
  }
  func.func @transform_2(%arg0: i32, %arg1: i32) -> (i32, i32, i32) {
    %c0_i32 = arith.constant 0 : i32
    %c0_i32_0 = arith.constant 0 : i32
    return %arg0, %c0_i32, %arg1 : i32, i32, i32
  }
}

</mosaic_0001>

<bundles_post_ra>
// kernel: tpu_custom_call.1
= control target key start
LH: loop header
LB: loop body
LE: loop exit
PB: predicated region body
PF: predicated region fallthrough
CT: control target
= control target key end

     0   :  { %7 = vsyncpa [#allocation3], 0  ;;  %s968_s0 = inlined_call_operand.hbm [shape: f32[2,4,256], index: 0, kind: input, shape index: {}]   ;;  %s969_s1 = inlined_call_operand.hbm [shape: s32[2,1,256], index: 1, kind: input, shape index: {}]   ;;  %s970_s2 = inlined_call_operand.hbm [shape: f32[2,1,256], index: 2, kind: output, shape index: {}]  }
   0x1   :  { %9 = vsyncpa [#allocation3 + $0x1], 0 }
   0x2   :  { %10 = vsyncpa [#allocation6], 0 }
   0x3   :  { %12 = vsyncpa [#allocation6 + $0x1], 0 }
   0x4   :  { %13 = vsyncpa [#allocation4], 0 }
   0x5   :  { %15 = vsyncpa [#allocation4 + $0x1], 0  ;;  %s734_s9 = smov 0   ;;  %s736_s10 = smov 0  }
   0x6   :  { %s738_s11 = smov 0   ;;  %s740_s12 = smov 0  }
   0x7   :  { %s742_s13 = smov 0   ;;  %s744_s14 = smov 0  }
   0x8 LB: > { %s466_s15 = sadd.s32 4294967295, %s713_s14   ;;  %s467_s16 = sadd.s32 4294967294, %s713_s14   ;;  %s713_s14 = sphi %s744_s14, %s21_s14   ;;  %s709_s13 = sphi %s742_s13, %s990_s13   ;;  %s705_s12 = sphi %s740_s12, %s989_s12   ;;  %s701_s11 = sphi %s738_s11, %s988_s11   ;;  %s697_s10 = sphi %s736_s10, %s987_s10   ;;  %s693_s9 = sphi %s734_s9, %s986_s9  }
   0x9   : > { %s33_s17 = sadd.s32 1, %s709_s13  ;;  %s42_s18 = sadd.s32 1, %s701_s11 }
   0xa   : > { %p35_p0 = scmp.ge.s32.totalorder %s33_s17, 2  ;;  %p49_p1 = scmp.ne.s32.totalorder %s701_s11, %s697_s10 }
   0xb   : > { %p50_p2 = scmp.eq.s32.totalorder %s713_s14, 0  ;;  %p55_p3 = scmp.ne.s32.totalorder %s697_s10, %s693_s9 }
   0xc   : > { %s992_s17 = smov (%p35_p0, %s33_s17), 0  ;;  %p56_p5 = scmp.eq.s32.totalorder %s466_s15, 0 }
   0xd   : > { %p775_p4 = por %p50_p2, %p49_p1  ;;  %s37_s20 = ssub.s32 %s709_s13, %s992_s17 }
   0xe   : > { %p109_p6 = scmp.eq.s32.totalorder %s466_s15, 1  ;;  %p40_p7 = scmp.eq.s32.totalorder %s37_s20, 0 }
   0xf   : > { %p781_p8 = por %p56_p5, %p55_p3  ;;  %p115_p10 = scmp.eq.s32.totalorder %s467_s16, 1 }
  0x10   : > { %p785_p9 = por %p109_p6, %p49_p1  ;;  %p505_p13 = scmp.lt.s32.totalorder %s713_s14, 2 }
  0x11   : > { %s974_s21 = scalar_select %p781_p8, 1, 0 }
  0x12   : > { %s975_s22 = scalar_select %p785_p9, 1, 0 }
  0x13   : > { %s790_s23 = scalar_select %p40_p7, %s701_s11, %s42_s18  }
  0x14   : > { %p792_p11 = por %p115_p10, %p55_p3  ;;  %s799_s25 = sand.u32 1, %s701_s11  }
  0x15   : > { %s470_s26 = sshll.u32 %s799_s25, 3  ;;  %s485_s27 = sshll.u32 %s709_s13, 7 }
  0x16   : > { %s976_s24 = scalar_select %p792_p11, 1, 0 }
  0x17   : > { %s806_s30 = scalar_lea.hbm %s968_s0, %s485_s27  ;;  %s139_s3 = scalar_lea.vmem [#allocation2], %s470_s26 }
  0x18   : > { %s149_s4 = sshll.u32 %s139_s3, 4  ;;  %p812_p0 = pnand %p505_p13, %p775_p4  ;;  %s808_s4 = int_to_ptr.vmem [resolvable:$true] %s149_s4 }
  0x19   : > { %s136_s6 = scalar_lea.sflag [#allocation3], %s799_s25  ;;  %s567_s7 = scalar_lea.hbm %s806_s30, 128 }
  0x1a   : > { %p568_p3 = scmp.ne.s32.totalorder %s806_s30, %s567_s7  ;;  %p569_p5 = pneg %p812_p0 }
  0x1b   : > { %s572_s16 = scalar_lea.hbm %s968_s0, 256  ;;  %p573_p4 = scmp.lt.u32.totalorder %s806_s30, %s968_s0 }
  0x1c   : > { %p570_p6 = pnand %p569_p5, %p568_p3  ;;  %p574_p10 = scmp.lt.u32.totalorder %s572_s16, %s567_s7 }
  0x1d   : > { %p576_p12 = scmp.lt.u32.totalorder %s567_s7, %s806_s30 }
  0x1e   : > { %p571_p7 = pneg %p570_p6  ;;  %p575_p13 = por %p574_p10, %p573_p4 }
  0x20   : > { %p577_p1 = por %p576_p12, %p575_p13 }
  0x22   : > { %p578_p2 = pnand %p577_p1, %p571_p7 }
  0x24   : > { %581 = shalt.err (!%p578_p2)
}
  0x25   : > { %s582_s20 = scalar_lea.vmem %s808_s4, 128  ;;  %s715_s26 = smov [#allocation2]  }
  0x26   : > { %p583_p3 = scmp.ne.s32.totalorder %s808_s4, %s582_s20  ;;  %s587_s27 = sshll.u32 %s715_s26, 4  ;;  %s588_s27 = int_to_ptr.vmem [resolvable:$false] %s587_s27 }
  0x27   : > { %s589_s28 = scalar_lea.vmem %s588_s27, 256  ;;  %p590_p9 = scmp.lt.s32.totalorder %s808_s4, %s588_s27 }
  0x28   : > { %p585_p6 = pnand %p583_p3, %p569_p5  ;;  %p591_p4 = scmp.lt.s32.totalorder %s589_s28, %s582_s20 }
  0x2a   : > { %p586_p11 = pneg %p585_p6  ;;  %p592_p10 = por %p591_p4, %p590_p9 }
  0x2c   : > { %p593_p12 = pnand %p592_p10, %p586_p11 }
  0x2e   : > { %596 = shalt.err (!%p593_p12)
}
  0x2f   : > { %497 = dma.hbm_to_vmem [thread:$0]  (!%p812_p0), %s806_s30, 128, %s808_s4, %s136_s6  }
  0x30   : > { %p978_p1 = scmp.lt.s32.totalorder %s713_s14, 3  ;;  %p979_p2 = scmp.ge.s32.totalorder %s713_s14, 1 }
  0x31   : > { %s473_s3 = sshll.u32 %s799_s25, 1  ;;  %s486_s7 = sshll.u32 %s709_s13, 5 }
  0x32   : > { %p848_p7 = pnand %p979_p2, %p978_p1  ;;  %s857_s16 = scalar_lea.hbm %s969_s1, %s486_s7 }
  0x33   : > { %s160_s18 = scalar_lea.vmem [#allocation5], %s473_s3  ;;  %s157_s30 = scalar_lea.sflag [#allocation6], %s799_s25 }
  0x34   : > { %s980_s29 = scalar_select %p848_p7, 1, 0 }
  0x35   : > { %s170_s19 = sshll.u32 %s160_s18, 4  ;;  %s597_s4 = scalar_lea.hbm %s857_s16, 32  ;;  %s171_s19 = int_to_ptr.vmem [resolvable:$true] %s170_s19 }
  0x36   : > { %p598_p9 = scmp.ne.s32.totalorder %s857_s16, %s597_s4  ;;  %s602_s26 = scalar_lea.hbm %s969_s1, 64 }
  0x37   : > { %p603_p3 = scmp.lt.u32.totalorder %s857_s16, %s969_s1  ;;  %p604_p6 = scmp.lt.u32.totalorder %s602_s26, %s597_s4 }
  0x38   : > { %p600_p11 = pnand %p598_p9, %p569_p5  ;;  %p606_p10 = scmp.lt.u32.totalorder %s597_s4, %s857_s16 }
  0x39   : > { %p605_p4 = por %p604_p6, %p603_p3 }
  0x3a   : > { %p601_p13 = pneg %p600_p11 }
  0x3b   : > { %p607_p12 = por %p606_p10, %p605_p4 }
  0x3d   : > { %p608_p1 = pnand %p607_p12, %p601_p13 }
  0x3f   : > { %611 = shalt.err (!%p608_p1)
}
  0x40   : > { %s612_s25 = scalar_lea.vmem %s171_s19, 32  ;;  %s716_s3 = smov [#allocation5]  }
  0x41   : > { %p613_p2 = scmp.ne.s32.totalorder %s171_s19, %s612_s25  ;;  %s617_s7 = sshll.u32 %s716_s3, 4  ;;  %s618_s7 = int_to_ptr.vmem [resolvable:$false] %s617_s7 }
  0x42   : > { %s619_s8 = scalar_lea.vmem %s618_s7, 64  ;;  %p620_p8 = scmp.lt.s32.totalorder %s171_s19, %s618_s7 }
  0x43   : > { %p615_p9 = pnand %p613_p2, %p569_p5  ;;  %p621_p7 = scmp.lt.s32.totalorder %s619_s8, %s612_s25 }
  0x45   : > { %p616_p11 = pneg %p615_p9  ;;  %p622_p3 = por %p621_p7, %p620_p8 }
  0x47   : > { %p623_p6 = pnand %p622_p3, %p616_p11 }
  0x49   : > { %626 = shalt.err (!%p623_p6)
}
  0x4a   : > { %500 = dma.hbm_to_vmem [thread:$0]  (!%p812_p0), %s857_s16, 32, %s171_s19, %s157_s30  }
  0x4b   : > { %p981_p13 = scmp.ne.s32.totalorder %s980_s29, 0 }
  0x4c   : > { %s882_s15 = sand.u32 (!%p981_p13), 1, %s697_s10   ;;  %p982_p5 = scmp.ne.s32.totalorder (!%p981_p13), %s974_s21, 0 }
  0x4d   : > { %179 = sbr.rel (%p981_p13) target bundleno = 192 (0xc0), region = 28  ;;  %s477_s18 = sshll.u32 (!%p981_p13), %s882_s15, 3 }
  0x4e   : > { %s182_s4 = scalar_lea.sflag (!%p981_p13), [#allocation3], %s882_s15  ;;  %s185_s6 = scalar_lea.vmem (!%p981_p13), [#allocation2], %s477_s18 }
  0x54   : > { %680 = dma.done.wait (%p982_p5), %s182_s4, 128  }
  0x55   : > { %682 = vsyncadd (%p982_p5), %s182_s4, 4294967168  ;;  %s478_s5 = sshll.u32 %s882_s15, 1  ;;  %s191_s29 = scalar_lea.sflag [#allocation6], %s882_s15 }
  0x56   : > { %s194_s16 = scalar_lea.vmem [#allocation5], %s478_s5 }
  0x57   : > { %684 = dma.done.wait (%p982_p5), %s191_s29, 32  }
  0x58   : > { %686 = vsyncadd (%p982_p5), %s191_s29, 4294967264  ;;  %vm228_vm0 = vcmask 1043456   ;;  %v223_v0 = vld [vmem:[%s185_s6] sm:$0xff]  ;;  %v267_v13 = vlaneseq  ;;  %v224_v21 = vld [vmem:[%s194_s16] sm:$0x3]  ;;  %s219_s21 = scalar_lea.vmem [#allocation7], %s478_s5 }
  0x59   : > { %v226_v1 = vcombine.high %v223_v0, %v223_v0  ;;  %v229_v2 = vsel %vm228_vm0, %v223_v0, -inf  ;;  %s356_s19 = sshll.u32 %s219_s21, 4  ;;  %s487_s30 = sshll.u32 %s705_s12, 5  ;;  %s916_s19 = int_to_ptr.vmem [resolvable:$true] %s356_s19 }
  0x5a   : > { %v230_v3 = vrot.slane %v229_v2, 4  ;;  %v901_v17 = vshrl.u32 %v267_v13, 7  ;;  %vm336_vm3 = vcmp.lt.s32.totalorder %v267_v13, 256  ;;  %s921_s27 = scalar_lea.hbm %s970_s2, %s487_s30  ;;  %s340_s28 = scalar_lea.sflag [#allocation4], %s882_s15 }
  0x5b   : > { %v236_v4 = vsel %vm228_vm0, %v226_v1, -inf  ;;  %s627_s25 = scalar_lea.vmem %s916_s19, 32  ;;  %p983_p0 = scmp.ne.s32.totalorder %s975_s22, 0 }
  0x5c   : > { %v231_v5 = vmax.f32 %v229_v2, %v230_v3  ;;  %v237_v6 = vrot.slane %v236_v4, 4  ;;  %v271_v20 = vsub.s32 0, %v901_v17  ;;  %v275_v23 = vsub.s32 1, %v901_v17  ;;  %p628_p8 = scmp.ne.s32.totalorder %s916_s19, %s627_s25  ;;  %s718_s12 = smov [#allocation7]  }
  0x5d   : > { %s631_s3 = sshll.u32 %s718_s12, 4  ;;  %s632_s3 = int_to_ptr.vmem [resolvable:$false] %s631_s3 }
  0x5e   : > { %v232_v7 = vrot.slane %v231_v5, 2  ;;  %v238_v8 = vmax.f32 %v236_v4, %v237_v6  ;;  %v272_v24 = vrot.slane %v224_v21, %v271_v20  ;;  %v276_v25 = vrot.slane %v224_v21, %v275_v23  ;;  %p629_p7 = pnand %p628_p8, %p983_p0  ;;  %s633_s7 = scalar_lea.vmem %s632_s3, 64 }
  0x5f   : > { %p634_p10 = scmp.lt.s32.totalorder %s916_s19, %s632_s3  ;;  %p635_p12 = scmp.lt.s32.totalorder %s633_s7, %s627_s25 }
  0x60   : > { %v233_v9 = vmax.f32 %v231_v5, %v232_v7  ;;  %v239_v10 = vrot.slane %v238_v8, 2  ;;  %vm277_vm1 = vcmp.eq.s32.totalorder %v901_v17, %v272_v24  ;;  %vm278_vm2 = vcmp.eq.s32.totalorder %v901_v17, %v276_v25  ;;  %p630_p4 = pneg %p629_p7 }
  0x61   : > { %v717_v5 = vmov 1966171168   ;;  %p636_p1 = por %p635_p12, %p634_p10 }
  0x62   : > { %v234_v11 = vrot.slane %v233_v9, 1  ;;  %v240_v12 = vmax.f32 %v238_v8, %v239_v10  ;;  %v320_v6 = vunpack.c.l.s4 %v717_v5 }
  0x63   : > { %p637_p2 = pnand %p636_p1, %p630_p4 }
  0x64   : > { %v235_v14 = vmax.f32 %v233_v9, %v234_v11  ;;  %v241_v15 = vrot.slane %v240_v12, 1 }
  0x66   : > { %v242_v16 = vmax.f32 %v240_v12, %v241_v15  ;;  %v321_v12 = vunpack.c.0.s8 %v320_v6 }
  0x68   : > { %v245_v18 = vcombine.low %v235_v14, %v242_v16 }
  0x6a   : > { %v247_v19 = vsub.f32 %v223_v0, %v245_v18  ;;  %v324_v18 = vsub.s32 %v321_v12, %v901_v17 }
  0x6c   : > { %v248_v22 = vmul.f32 1.442695, %v247_v19  ;;  %v280_v26 = vcombine.high %v247_v19, %v247_v19  ;;  %v282_v27 = vsel %vm277_vm1, %v247_v19, 0.0 }
  0x6d   : > { %v284_v30 = vsel %vm228_vm0, %v282_v27, 0.0 }
  0x6e   : > { %557 = vpow2.f32 %v248_v22  ;;  %v283_v28 = vsel %vm278_vm2, %v280_v26, 0.0  ;;  %v285_v36 = vrot.slane %v284_v30, 4 }
  0x6f   : > { %v291_v34 = vsel %vm228_vm0, %v283_v28, 0.0 }
  0x70   : > { %v292_v39 = vrot.slane %v291_v34, 4  ;;  %v286_v42 = vadd.f32 %v285_v36, %v284_v30 }
  0x72   : > { %v293_v45 = vadd.f32 %v292_v39, %v291_v34  ;;  %v287_v48 = vrot.slane %v286_v42, 2 }
  0x74   : > { %v294_v51 = vrot.slane %v293_v45, 2  ;;  %v288_v53 = vadd.f32 %v287_v48, %v286_v42 }
  0x76   : > { %v295_v54 = vadd.f32 %v294_v51, %v293_v45  ;;  %v289_v55 = vrot.slane %v288_v53, 1 }
  0x78   : > { %v558_v29 = vpop.eup %557  ;;  %v296_v56 = vrot.slane %v295_v54, 1  ;;  %v290_v57 = vadd.f32 %v289_v55, %v288_v53 }
  0x79   : > { %v251_v31 = vcombine.high %v558_v29, %v558_v29  ;;  %v253_v32 = vsel %vm228_vm0, %v558_v29, 0.0 }
  0x7a   : > { %v254_v33 = vrot.slane %v253_v32, 4  ;;  %v297_v59 = vadd.f32 %v296_v56, %v295_v54 }
  0x7b   : > { %v260_v35 = vsel %vm228_vm0, %v251_v31, 0.0 }
  0x7c   : > { %v255_v37 = vadd.f32 %v254_v33, %v253_v32  ;;  %v261_v38 = vrot.slane %v260_v35, 4 }
  0x7e   : > { %v256_v40 = vrot.slane %v255_v37, 2  ;;  %v262_v41 = vadd.f32 %v261_v38, %v260_v35 }
  0x80   : > { %v257_v43 = vadd.f32 %v256_v40, %v255_v37  ;;  %v263_v44 = vrot.slane %v262_v41, 2 }
  0x82   : > { %v258_v46 = vrot.slane %v257_v43, 1  ;;  %v264_v47 = vadd.f32 %v263_v44, %v262_v41 }
  0x84   : > { %v259_v49 = vadd.f32 %v258_v46, %v257_v43  ;;  %v265_v50 = vrot.slane %v264_v47, 1 }
  0x86   : > { %v266_v52 = vadd.f32 %v265_v50, %v264_v47  ;;  %559 = vlog2.f32 %v259_v49 }
  0x88   : > { %561 = vlog2.f32 %v266_v52 }
  0x90   : > { %v560_v58 = vpop.eup %559 }
  0x91   : > { %v299_v60 = vmul.f32 0.6931472, %v560_v58 }
  0x92   : > { %v562_v61 = vpop.eup %561 }
  0x93   : > { %v301_v62 = vmul.f32 0.6931472, %v562_v61  ;;  %v302_v63 = vsub.f32 %v290_v57, %v299_v60 }
  0x95   : > { %v303_v0 = vsub.f32 %v297_v59, %v301_v62  ;;  %v304_v1 = vmul.f32 1.442695, %v302_v63 }
  0x97   : > { %563 = vpow2.f32 %v304_v1  ;;  %v306_v2 = vmul.f32 1.442695, %v303_v0 }
  0x99   : > { %565 = vpow2.f32 %v306_v2 }
  0xa1   : > { %v564_v3 = vpop.eup %563 }
  0xa2   : > { %v308_v4 = vsub.f32 1.0, %v564_v3 }
  0xa3   : > { %v566_v7 = vpop.eup %565 }
  0xa4   : > { %v309_v8 = vsub.f32 1.0, %v566_v7  ;;  %v310_v9 = vmul.f32 %v308_v4, %v308_v4 }
  0xa6   : > { %v311_v10 = vmul.f32 %v309_v8, %v309_v8  ;;  %v312_v11 = vmul.f32 -0.5, %v310_v9 }
  0xa8   : > { %v313_v14 = vmul.f32 -0.5, %v311_v10  ;;  %v314_v15 = vmul.f32 %v312_v11, %v302_v63 }
  0xaa   : > { %v315_v16 = vmul.f32 %v313_v14, %v303_v0 }
  0xac   : > { %v318_v19 = vcombine.low %v314_v15, %v315_v16 }
  0xae   : > { %v325_v20 = vrot.slane %v318_v19, %v324_v18 }
  0xb0   : > { %v332_v21 = vrot.slane %v325_v20, %v324_v18 }
  0xb2   : > { %338 = vst.msk [vmem:[%s219_s21] sm:$0x3] %vm336_vm3, %v332_v21 }
  0xb3   : > { %640 = shalt.err (!%p637_p2)
}
  0xb4   : > { %s641_s8 = scalar_lea.hbm %s921_s27, 32  ;;  %s645_s4 = scalar_lea.hbm %s970_s2, 64 }
  0xb5   : > { %p642_p9 = scmp.ne.s32.totalorder %s921_s27, %s641_s8  ;;  %p646_p6 = scmp.lt.u32.totalorder %s921_s27, %s970_s2 }
  0xb6   : > { %p647_p13 = scmp.lt.u32.totalorder %s645_s4, %s641_s8  ;;  %p649_p8 = scmp.lt.u32.totalorder %s641_s8, %s921_s27 }
  0xb7   : > { %p643_p11 = pnand %p642_p9, %p983_p0 }
  0xb8   : > { %p648_p5 = por %p647_p13, %p646_p6 }
  0xb9   : > { %p644_p3 = pneg %p643_p11 }
  0xba   : > { %p650_p7 = por %p649_p8, %p648_p5 }
  0xbc   : > { %p651_p4 = pnand %p650_p7, %p644_p3 }
  0xbe   : > { %654 = shalt.err (!%p651_p4)
}
  0xbf   : > { %492 = dma.vmem_to_hbm [thread:$0]  (%p983_p0), %s916_s19, 32, %s921_s27, %s340_s28  }
  0xc0 PF: > { %s368_s29 = sand.u32 1, %s693_s9   ;;  %p984_p10 = scmp.ne.s32.totalorder %s976_s24, 0 }
  0xc1   : > { %p985_p12 = scmp.ge.s32.totalorder %s713_s14, 2  ;;  %s369_s16 = scalar_lea.sflag [#allocation4], %s368_s29 }
  0xc3   : > { %p502_p1 = pnand %p985_p12, %p984_p10 }
  0xc5   : > { %688 = dma.done.wait (!%p502_p1), %s369_s16, 32  }
  0xc6   : > { %690 = vsyncadd (!%p502_p1), %s369_s16, 4294967264  ;;  %s21_s14 = sadd.s32 1, %s713_s14   ;;  %s986_s9 = smov %s697_s10 }
  0xc7   : > { %p18_p2 = scmp.ge.s32.totalorder %s21_s14, 4   ;;  %s987_s10 = smov %s701_s11 }
  0xc8   : > { %s988_s11 = smov %s790_s23  ;;  %s989_s12 = smov %s709_s13 }
  0xc9   : > { %s990_s13 = smov %s992_s17  ;;  %20 = sbr.rel (!%p18_p2) target bundleno = 8 (0x8), region = 86 }
  0xd0   :  { %374 = vsyncpa [#allocation3], 1 }
  0xd1   :  { %376 = vsyncpa [#allocation3 + $0x1], 1 }
  0xd2   :  { %377 = vsyncpa [#allocation6], 1 }
  0xd3   :  { %379 = vsyncpa [#allocation6 + $0x1], 1 }
  0xd4   :  { %380 = vsyncpa [#allocation4], 1 }
  0xd5   :  { %382 = vsyncpa [#allocation4 + $0x1], 1 }

</bundles_post_ra>
